<compile_context>
chip_gen: v7x
topology: tpu7x:2x2x1
jax: 0.10.0
libtpu: 0.0.40
codegen_flags: <defaults>
</compile_context>

<pallas_src>
import functools
import math

import jax
import jax.numpy as jnp
from jax.experimental import pallas as pl
from jax.experimental.pallas import tpu as pltpu


def neighbor_attention_kernel(hV_ref, hE_ref, mask_ref,
                              wqT_ref, wkT_ref, wvT_ref, woT_ref,
                              hsum_ref, hexp_ref, out_ref):
    TN = hV_ref.shape[1]          # nodes per tile
    H = hV_ref.shape[2]           # num_hidden
    K = mask_ref.shape[2]         # top_k neighbors
    NH = hsum_ref.shape[1]        # num_heads
    f32 = jnp.float32

    # --- projections (MXU, bf16 operands, f32 accumulation) ------------------
    hv = hV_ref[0].astype(jnp.bfloat16)                            # [TN, H]
    he = hE_ref[0].astype(jnp.bfloat16)                            # [TN*K, Hin]

    q = jnp.dot(hv, wqT_ref[...], preferred_element_type=f32)      # [TN, H]
    kk = jnp.dot(he, wkT_ref[...], preferred_element_type=f32)     # [TN*K, H]
    vv = jnp.dot(he, wvT_ref[...], preferred_element_type=f32)     # [TN*K, H]

    # --- per-head scaled dot-product logits ----------------------------------
    # logits[n,k,h] = sum_j q[n, h*d+j] * kk[n*K+k, h*d+j] / sqrt(d)
    # Broadcast multiply keeps lanes at H; the per-head sum (+ 1/sqrt(d) scale)
    # is a tiny block-diagonal matmul -> no minor-dim reshapes.
    prod = q[:, None, :] * kk.reshape(TN, K, H)                    # [TN, K, H]  f32
    logits = jnp.dot(prod.reshape(TN * K, H), hsum_ref[...],
                     preferred_element_type=f32).reshape(TN, K, NH)

    # --- numerically-stable masked softmax over the K neighbors --------------
    mask3 = mask_ref[0].astype(f32)[:, :, None]                    # [TN, K, 1]
    neg = jnp.finfo(f32).min                                       # matches torch np.float32 min
    ml = jnp.where(mask3 > 0, logits, neg)
    mx = jnp.max(ml, axis=1, keepdims=True)                        # [TN, 1, NH]
    p = jnp.exp(ml - mx)
    s = jnp.sum(p, axis=1, keepdims=True)
    attend = p * pl.reciprocal(s, approx=True) * mask3             # [TN, K, NH]

    # --- weighted sum of V per head -------------------------------------------
    # Expand per-head weights back to H lanes (tiny matmul), contract over K.
    wfull = jnp.dot(attend.reshape(TN * K, NH), hexp_ref[...],
                    preferred_element_type=f32)                    # [TN*K, H]
    ctx = jnp.sum(wfull.reshape(TN, K, H) * vv.reshape(TN, K, H), axis=1)   # [TN, H]

    # --- output projection -----------------------------------------------------
    out = jnp.dot(ctx.astype(jnp.bfloat16), woT_ref[...], preferred_element_type=f32)
    out_ref[0] = out.astype(out_ref.dtype)


@functools.partial(jax.jit, static_argnames=("num_heads", "node_tile"))
def neighbor_attention(h_V, h_E, w_Q, w_K, w_V, w_O, mask_attend=None,
                       *, num_heads=4, node_tile=8):
    B, N, H = h_V.shape
    _, _, K, Hin = h_E.shape
    assert H % num_heads == 0
    assert N % node_tile == 0, "node_tile must divide N (pad N in the caller if needed)"
    d = H // num_heads
    TN = node_tile
    # VMEM per step is O(TN*K*max(H,Hin)) + weights; with TN=8..256 this stays far
    # below the 32 MiB scoped default on all of v5e/v6e/v7x.

    # Layout plumbing hoisted out of the kernel (free on the XLA side):
    #   * weights pre-transposed to [in, out] and cast to bf16 (no in-kernel .T / cast loop)
    #   * h_E flattened to [B, N*K, Hin] so each grid step gets one lane-dense 2-D slab
    wqT = w_Q.T.astype(jnp.bfloat16)            # [H, H]
    wkT = w_K.T.astype(jnp.bfloat16)            # [Hin, H]
    wvT = w_V.T.astype(jnp.bfloat16)            # [Hin, H]
    woT = w_O.T.astype(jnp.bfloat16)            # [H, H]
    hE2 = h_E.reshape(B, N * K, Hin)

    if mask_attend is None:
        mask = jnp.ones((B, N, K), jnp.float32)          # plain softmax path
    else:
        mask = mask_attend.astype(jnp.float32)

    # Static per-head segment-sum / expand matrices (1/sqrt(d) folded into hsum).
    head_of_col = jnp.arange(H, dtype=jnp.int32) // d                          # [H]
    hsum = (head_of_col[:, None] == jnp.arange(num_heads)[None, :]).astype(
        jnp.float32) * (1.0 / math.sqrt(d))                                    # [H, NH]
    hexp = (jnp.arange(num_heads)[:, None] == head_of_col[None, :]).astype(
        jnp.float32)                                                           # [NH, H]

    return pl.pallas_call(
        neighbor_attention_kernel,
        out_shape=jax.ShapeDtypeStruct((B, N, H), h_V.dtype),
        grid_spec=pltpu.PrefetchScalarGridSpec(
            num_scalar_prefetch=0,
            grid=(B, N // TN),
            in_specs=[
                pl.BlockSpec((1, TN, H), lambda b, n: (b, n, 0)),          # h_V tile
                pl.BlockSpec((1, TN * K, Hin), lambda b, n: (b, n, 0)),    # h_E tile (flattened)
                pl.BlockSpec((1, TN, K), lambda b, n: (b, n, 0)),          # mask tile
                pl.BlockSpec((H, H), lambda b, n: (0, 0)),                 # W_Q.T (bf16)
                pl.BlockSpec((Hin, H), lambda b, n: (0, 0)),               # W_K.T (bf16)
                pl.BlockSpec((Hin, H), lambda b, n: (0, 0)),               # W_V.T (bf16)
                pl.BlockSpec((H, H), lambda b, n: (0, 0)),                 # W_O.T (bf16)
                pl.BlockSpec((H, num_heads), lambda b, n: (0, 0)),         # head-sum matrix
                pl.BlockSpec((num_heads, H), lambda b, n: (0, 0)),         # head-expand matrix
            ],
            out_specs=pl.BlockSpec((1, TN, H), lambda b, n: (b, n, 0)),
        ),
        compiler_params=pltpu.CompilerParams(
            dimension_semantics=("parallel", "parallel")),
    )(h_V, hE2, mask, wqT, wkT, wvT, woT, hsum, hexp)


def reference(h_V, h_E, w_Q, w_K, w_V, w_O, mask_attend, num_heads):
    """Pure-JAX (f32) reference matching the PyTorch forward."""
    B, N, K, Hin = h_E.shape
    H = w_Q.shape[0]
    d = H // num_heads
    Q = (h_V @ w_Q.T).reshape(B, N, 1, num_heads, 1, d)
    Kf = (h_E @ w_K.T).reshape(B, N, K, num_heads, d, 1)
    V = (h_E @ w_V.T).reshape(B, N, K, num_heads, d)
    logits = jnp.matmul(Q, Kf).reshape(B, N, K, num_heads)
    logits = jnp.swapaxes(logits, -2, -1) / math.sqrt(d)            # [B, N, heads, K]
    if mask_attend is not None:
        mask = jnp.broadcast_to(mask_attend[:, :, None, :], logits.shape)
        logits = jnp.where(mask > 0, logits, jnp.finfo(jnp.float32).min)
        attend = jax.nn.softmax(logits, axis=-1) * mask
    else:
        attend = jax.nn.softmax(logits, axis=-1)
    upd = jnp.matmul(attend[..., None, :], jnp.swapaxes(V, 2, 3))   # [B, N, heads, 1, d]
    upd = upd.reshape(B, N, H)
    return upd @ w_O.T


if __name__ == "__main__":
    B, N, K = 2, 32, 8            # batch, nodes, top_k neighbors
    H, Hin, NHEADS = 128, 256, 4  # num_hidden, num_in (neighbor feature width), heads

    key = jax.random.PRNGKey(0)
    k_hv, k_he, k_m, k_q, k_k, k_v, k_o = jax.random.split(key, 7)

    h_V = jax.random.normal(k_hv, (B, N, H), dtype=jnp.float32)
    h_E = jax.random.normal(k_he, (B, N, K, Hin), dtype=jnp.float32)

    # Binary attention mask; keep at least one valid neighbor per node.
    mask_attend = (jax.random.uniform(k_m, (B, N, K)) > 0.3).astype(jnp.float32)
    mask_attend = mask_attend.at[..., 0].set(1.0)

    # PyTorch nn.Linear(in, out, bias=False) default init: U(-1/sqrt(in), 1/sqrt(in)).
    lim_h = 1.0 / math.sqrt(H)
    lim_in = 1.0 / math.sqrt(Hin)
    w_Q = jax.random.uniform(k_q, (H, H), jnp.float32, -lim_h, lim_h)
    w_K = jax.random.uniform(k_k, (H, Hin), jnp.float32, -lim_in, lim_in)
    w_V = jax.random.uniform(k_v, (H, Hin), jnp.float32, -lim_in, lim_in)
    w_O = jax.random.uniform(k_o, (H, H), jnp.float32, -lim_h, lim_h)

    out = neighbor_attention(h_V, h_E, w_Q, w_K, w_V, w_O, mask_attend,
                             num_heads=NHEADS, node_tile=8)
    out = jax.block_until_ready(out)

    ref = reference(h_V, h_E, w_Q, w_K, w_V, w_O, mask_attend, NHEADS)
    assert out.shape == (B, N, H), out.shape
    max_err = float(jnp.max(jnp.abs(out - ref)))
    # bf16 MXU operands with f32 accumulation -> expect O(1e-3) max abs error.
    assert jnp.allclose(out, ref, atol=2e-2, rtol=2e-2), max_err

    print("KERNEL_OK")
</pallas_src>

<mosaic_0001>
module attributes {stable_mosaic.version = 11 : i64} {
  func.func @neighbor_attention_kernel(%arg0: i32, %arg1: i32, %arg2: memref<1x8x128xf32, #tpu.memory_space<vmem>>, %arg3: memref<1x64x256xf32, #tpu.memory_space<vmem>>, %arg4: memref<1x8x8xf32, #tpu.memory_space<vmem>>, %arg5: memref<128x128xbf16, #tpu.memory_space<vmem>>, %arg6: memref<256x128xbf16, #tpu.memory_space<vmem>>, %arg7: memref<256x128xbf16, #tpu.memory_space<vmem>>, %arg8: memref<128x128xbf16, #tpu.memory_space<vmem>>, %arg9: memref<128x4xf32, #tpu.memory_space<vmem>>, %arg10: memref<4x128xf32, #tpu.memory_space<vmem>>, %arg11: memref<1x8x128xf32, #tpu.memory_space<vmem>>) attributes {dimension_semantics = [#tpu.dimension_semantics<parallel>, #tpu.dimension_semantics<parallel>], iteration_bounds = array<i64: 2, 4>, scalar_prefetch = 0 : i64, scratch_operands = 0 : i64, tpu.core_type = #tpu.core_type<tc>, window_params = [{transform_indices = @transform_0, window_bounds = array<i64: 1, 8, 128>}, {transform_indices = @transform_1, window_bounds = array<i64: 1, 64, 256>}, {transform_indices = @transform_2, window_bounds = array<i64: 1, 8, 8>}, {pipeline_mode = #tpu.pipeline_mode<synchronous>, transform_indices = @transform_3, window_bounds = array<i64: 128, 128>}, {pipeline_mode = #tpu.pipeline_mode<synchronous>, transform_indices = @transform_4, window_bounds = array<i64: 256, 128>}, {pipeline_mode = #tpu.pipeline_mode<synchronous>, transform_indices = @transform_5, window_bounds = array<i64: 256, 128>}, {pipeline_mode = #tpu.pipeline_mode<synchronous>, transform_indices = @transform_6, window_bounds = array<i64: 128, 128>}, {pipeline_mode = #tpu.pipeline_mode<synchronous>, transform_indices = @transform_7, window_bounds = array<i64: 128, 4>}, {pipeline_mode = #tpu.pipeline_mode<synchronous>, transform_indices = @transform_8, window_bounds = array<i64: 4, 128>}, {transform_indices = @transform_9, window_bounds = array<i64: 1, 8, 128>}]} {
    %c0 = arith.constant 0 : index
    %c0_0 = arith.constant 0 : index
    %c0_1 = arith.constant 0 : index
    %0 = vector.load %arg2[%c0, %c0_0, %c0_1] : memref<1x8x128xf32, #tpu.memory_space<vmem>>, vector<1x8x128xf32>
    %1 = vector.shape_cast %0 : vector<1x8x128xf32> to vector<8x128xf32>
    %2 = arith.truncf %1 : vector<8x128xf32> to vector<8x128xbf16>
    %c0_2 = arith.constant 0 : index
    %c0_3 = arith.constant 0 : index
    %c0_4 = arith.constant 0 : index
    %3 = vector.load %arg3[%c0_2, %c0_3, %c0_4] : memref<1x64x256xf32, #tpu.memory_space<vmem>>, vector<1x64x256xf32>
    %4 = vector.shape_cast %3 : vector<1x64x256xf32> to vector<64x256xf32>
    %5 = arith.truncf %4 : vector<64x256xf32> to vector<64x256xbf16>
    %c0_5 = arith.constant 0 : index
    %c0_6 = arith.constant 0 : index
    %6 = vector.load %arg5[%c0_5, %c0_6] : memref<128x128xbf16, #tpu.memory_space<vmem>>, vector<128x128xbf16>
    %cst = arith.constant dense<0.000000e+00> : vector<8x128xf32>
    %7 = tpu.matmul %2, %6, %cst {dimension_numbers = #tpu.dot_dimension_numbers<[1], [0], [0], [1], [0, 0, 1, 1], [], []>} : vector<8x128xbf16>, vector<128x128xbf16>, vector<8x128xf32> -> vector<8x128xf32>
    %c0_7 = arith.constant 0 : index
    %c0_8 = arith.constant 0 : index
    %8 = vector.load %arg6[%c0_7, %c0_8] : memref<256x128xbf16, #tpu.memory_space<vmem>>, vector<256x128xbf16>
    %cst_9 = arith.constant dense<0.000000e+00> : vector<64x128xf32>
    %9 = tpu.matmul %5, %8, %cst_9 {dimension_numbers = #tpu.dot_dimension_numbers<[1], [0], [0], [1], [0, 0, 1, 1], [], []>} : vector<64x256xbf16>, vector<256x128xbf16>, vector<64x128xf32> -> vector<64x128xf32>
    %c0_10 = arith.constant 0 : index
    %c0_11 = arith.constant 0 : index
    %10 = vector.load %arg7[%c0_10, %c0_11] : memref<256x128xbf16, #tpu.memory_space<vmem>>, vector<256x128xbf16>
    %cst_12 = arith.constant dense<0.000000e+00> : vector<64x128xf32>
    %11 = tpu.matmul %5, %10, %cst_12 {dimension_numbers = #tpu.dot_dimension_numbers<[1], [0], [0], [1], [0, 0, 1, 1], [], []>} : vector<64x256xbf16>, vector<256x128xbf16>, vector<64x128xf32> -> vector<64x128xf32>
    %12 = vector.shape_cast %7 : vector<8x128xf32> to vector<8x1x128xf32>
    %13 = vector.shape_cast %9 : vector<64x128xf32> to vector<8x8x128xf32>
    %14 = vector.broadcast %12 : vector<8x1x128xf32> to vector<8x8x128xf32>
    %15 = arith.mulf %14, %13 : vector<8x8x128xf32>
    %16 = vector.shape_cast %15 : vector<8x8x128xf32> to vector<64x128xf32>
    %c0_13 = arith.constant 0 : index
    %c0_14 = arith.constant 0 : index
    %17 = vector.load %arg9[%c0_13, %c0_14] : memref<128x4xf32, #tpu.memory_space<vmem>>, vector<128x4xf32>
    %cst_15 = arith.constant dense<0.000000e+00> : vector<64x4xf32>
    %18 = tpu.matmul %16, %17, %cst_15 {dimension_numbers = #tpu.dot_dimension_numbers<[1], [0], [0], [1], [0, 0, 1, 1], [], []>} : vector<64x128xf32>, vector<128x4xf32>, vector<64x4xf32> -> vector<64x4xf32>
    %19 = vector.shape_cast %18 : vector<64x4xf32> to vector<8x8x4xf32>
    %c0_16 = arith.constant 0 : index
    %c0_17 = arith.constant 0 : index
    %c0_18 = arith.constant 0 : index
    %20 = vector.load %arg4[%c0_16, %c0_17, %c0_18] : memref<1x8x8xf32, #tpu.memory_space<vmem>>, vector<1x8x8xf32>
    %21 = vector.shape_cast %20 : vector<1x8x8xf32> to vector<8x8xf32>
    %22 = vector.shape_cast %21 : vector<8x8xf32> to vector<8x8x1xf32>
    %cst_19 = arith.constant 0.000000e+00 : f32
    %23 = vector.broadcast %cst_19 : f32 to vector<8x8x1xf32>
    %24 = arith.cmpf ogt, %22, %23 : vector<8x8x1xf32>
    %cst_20 = arith.constant -3.40282347E+38 : f32
    %25 = vector.shape_cast %24 : vector<8x8x1xi1> to vector<8x8x1xi1>
    %26 = vector.broadcast %25 : vector<8x8x1xi1> to vector<8x8x4xi1>
    %27 = vector.broadcast %cst_20 : f32 to vector<8x8x4xf32>
    %28 = arith.select %26, %19, %27 : vector<8x8x4xi1>, vector<8x8x4xf32>
    %cst_21 = arith.constant dense<0xFF800000> : vector<8x4xf32>
    %29 = vector.multi_reduction <maximumf>, %28, %cst_21 [1] : vector<8x8x4xf32> to vector<8x4xf32>
    %30 = vector.shape_cast %29 : vector<8x4xf32> to vector<8x1x4xf32>
    %31 = vector.broadcast %30 : vector<8x1x4xf32> to vector<8x8x4xf32>
    %32 = arith.subf %28, %31 : vector<8x8x4xf32>
    %33 = math.exp %32 : vector<8x8x4xf32>
    %cst_22 = arith.constant dense<0.000000e+00> : vector<8x4xf32>
    %34 = vector.multi_reduction <add>, %33, %cst_22 [1] : vector<8x8x4xf32> to vector<8x4xf32>
    %35 = vector.shape_cast %34 : vector<8x4xf32> to vector<8x1x4xf32>
    %36 = tpu.reciprocal %35 {approx = true} : vector<8x1x4xf32> -> vector<8x1x4xf32>
    %37 = vector.broadcast %36 : vector<8x1x4xf32> to vector<8x8x4xf32>
    %38 = arith.mulf %33, %37 : vector<8x8x4xf32>
    %39 = vector.broadcast %22 : vector<8x8x1xf32> to vector<8x8x4xf32>
    %40 = arith.mulf %38, %39 : vector<8x8x4xf32>
    %41 = vector.shape_cast %40 : vector<8x8x4xf32> to vector<64x4xf32>
    %c0_23 = arith.constant 0 : index
    %c0_24 = arith.constant 0 : index
    %42 = vector.load %arg10[%c0_23, %c0_24] : memref<4x128xf32, #tpu.memory_space<vmem>>, vector<4x128xf32>
    %cst_25 = arith.constant dense<0.000000e+00> : vector<64x128xf32>
    %43 = tpu.matmul %41, %42, %cst_25 {dimension_numbers = #tpu.dot_dimension_numbers<[1], [0], [0], [1], [0, 0, 1, 1], [], []>} : vector<64x4xf32>, vector<4x128xf32>, vector<64x128xf32> -> vector<64x128xf32>
    %44 = vector.shape_cast %43 : vector<64x128xf32> to vector<8x8x128xf32>
    %45 = vector.shape_cast %11 : vector<64x128xf32> to vector<8x8x128xf32>
    %46 = arith.mulf %44, %45 : vector<8x8x128xf32>
    %cst_26 = arith.constant dense<0.000000e+00> : vector<8x128xf32>
    %47 = vector.multi_reduction <add>, %46, %cst_26 [1] : vector<8x8x128xf32> to vector<8x128xf32>
    %48 = arith.truncf %47 : vector<8x128xf32> to vector<8x128xbf16>
    %c0_27 = arith.constant 0 : index
    %c0_28 = arith.constant 0 : index
    %49 = vector.load %arg8[%c0_27, %c0_28] : memref<128x128xbf16, #tpu.memory_space<vmem>>, vector<128x128xbf16>
    %cst_29 = arith.constant dense<0.000000e+00> : vector<8x128xf32>
    %50 = tpu.matmul %48, %49, %cst_29 {dimension_numbers = #tpu.dot_dimension_numbers<[1], [0], [0], [1], [0, 0, 1, 1], [], []>} : vector<8x128xbf16>, vector<128x128xbf16>, vector<8x128xf32> -> vector<8x128xf32>
    %c0_30 = arith.constant 0 : index
    %c0_31 = arith.constant 0 : index
    %c0_32 = arith.constant 0 : index
    %51 = vector.load %arg11[%c0_30, %c0_31, %c0_32] : memref<1x8x128xf32, #tpu.memory_space<vmem>>, vector<1x8x128xf32>
    %52 = vector.shape_cast %51 : vector<1x8x128xf32> to vector<8x128xf32>
    %53 = vector.shape_cast %50 : vector<8x128xf32> to vector<1x8x128xf32>
    tpu.vector_store %arg11[%c0_30, %c0_31, %c0_32], %53 {strides = array<i32>} : memref<1x8x128xf32, #tpu.memory_space<vmem>>, vector<1x8x128xf32>,
    return
  }
  func.func @transform_0(%arg0: i32, %arg1: i32) -> (i32, i32, i32) {
    %c0_i32 = arith.constant 0 : i32
    %c0_i32_0 = arith.constant 0 : i32
    return %arg0, %arg1, %c0_i32 : i32, i32, i32
  }
  func.func @transform_1(%arg0: i32, %arg1: i32) -> (i32, i32, i32) {
    %c0_i32 = arith.constant 0 : i32
    %c0_i32_0 = arith.constant 0 : i32
    return %arg0, %arg1, %c0_i32 : i32, i32, i32
  }
  func.func @transform_2(%arg0: i32, %arg1: i32) -> (i32, i32, i32) {
    %c0_i32 = arith.constant 0 : i32
    %c0_i32_0 = arith.constant 0 : i32
    return %arg0, %arg1, %c0_i32 : i32, i32, i32
  }
  func.func @transform_3(%arg0: i32, %arg1: i32) -> (i32, i32) {
    %c0_i32 = arith.constant 0 : i32
    %c0_i32_0 = arith.constant 0 : i32
    %c0_i32_1 = arith.constant 0 : i32
    return %c0_i32, %c0_i32_0 : i32, i32
  }
  func.func @transform_4(%arg0: i32, %arg1: i32) -> (i32, i32) {
    %c0_i32 = arith.constant 0 : i32
    %c0_i32_0 = arith.constant 0 : i32
    %c0_i32_1 = arith.constant 0 : i32
    return %c0_i32, %c0_i32_0 : i32, i32
  }
  func.func @transform_5(%arg0: i32, %arg1: i32) -> (i32, i32) {
    %c0_i32 = arith.constant 0 : i32
    %c0_i32_0 = arith.constant 0 : i32
    %c0_i32_1 = arith.constant 0 : i32
    return %c0_i32, %c0_i32_0 : i32, i32
  }
  func.func @transform_6(%arg0: i32, %arg1: i32) -> (i32, i32) {
    %c0_i32 = arith.constant 0 : i32
    %c0_i32_0 = arith.constant 0 : i32
    %c0_i32_1 = arith.constant 0 : i32
    return %c0_i32, %c0_i32_0 : i32, i32
  }
  func.func @transform_7(%arg0: i32, %arg1: i32) -> (i32, i32) {
    %c0_i32 = arith.constant 0 : i32
    %c0_i32_0 = arith.constant 0 : i32
    %c0_i32_1 = arith.constant 0 : i32
    return %c0_i32, %c0_i32_0 : i32, i32
  }
  func.func @transform_8(%arg0: i32, %arg1: i32) -> (i32, i32) {
    %c0_i32 = arith.constant 0 : i32
    %c0_i32_0 = arith.constant 0 : i32
    %c0_i32_1 = arith.constant 0 : i32
    return %c0_i32, %c0_i32_0 : i32, i32
  }
  func.func @transform_9(%arg0: i32, %arg1: i32) -> (i32, i32, i32) {
    %c0_i32 = arith.constant 0 : i32
    %c0_i32_0 = arith.constant 0 : i32
    return %arg0, %arg1, %c0_i32 : i32, i32, i32
  }
}

</mosaic_0001>

<bundles_post_ra>
// kernel: neighbor_attention.1
= control target key start
LH: loop header
LB: loop body
LE: loop exit
PB: predicated region body
PF: predicated region fallthrough
CT: control target
= control target key end

     0   :  { %14 = vsyncpa [#allocation3], 0  ;;  %s3029_s0 = inlined_call_operand.vmem [shape: f32[2,32,128], index: 0, kind: input, shape index: {}]   ;;  %s3030_s1 = inlined_call_operand.vmem [shape: f32[2,256,256], index: 1, kind: input, shape index: {}]   ;;  %s3031_s2 = inlined_call_operand.vmem [shape: f32[2,32,8], index: 2, kind: input, shape index: {}]   ;;  %s3032_s3 = inlined_call_operand.vmem [shape: bf16[128,128], index: 3, kind: input, shape index: {}]   ;;  %s3033_s4 = inlined_call_operand.vmem [shape: bf16[256,128], index: 4, kind: input, shape index: {}]   ;;  %s3034_s5 = inlined_call_operand.vmem [shape: bf16[256,128], index: 5, kind: input, shape index: {}]   ;;  %s3035_s6 = inlined_call_operand.vmem [shape: bf16[128,128], index: 6, kind: input, shape index: {}]   ;;  %s3036_s7 = inlined_call_operand.vmem [shape: f32[128,4], index: 7, kind: input, shape index: {}]   ;;  %s3037_s8 = inlined_call_operand.vmem [shape: f32[4,128], index: 8, kind: input, shape index: {}]   ;;  %s3038_s9 = inlined_call_operand.hbm [shape: f32[2,32,128], index: 9, kind: output, shape index: {}]  }
   0x1   :  { %16 = vsyncpa [#allocation3 + $0x1], 0  ;;  %s2521_s30 = smov 0   ;;  %s2523_s10 = smov 0  }
   0x2   :  { %s2525_s11 = smov 0   ;;  %s2527_s12 = smov 0  }
   0x3   :  { %s2529_s13 = smov 0   ;;  %s2531_s14 = smov 0  }
   0x4   :  { %s2533_s15 = smov 0   ;;  %s2535_s16 = smov 0  }
   0x5 LB: > { %3045 = sst [smem:[#allocation5_spill]] %s2445_s11  ;;  %s1880_s17 = sadd.s32 4294967295, %s2465_s16   ;;  %s2465_s16 = sphi %s2535_s16, %s22_s16   ;;  %s2461_s15 = sphi %s2533_s15, %s3060_s15   ;;  %s2457_s14 = sphi %s2531_s14, %s3059_s14   ;;  %s2453_s13 = sphi %s2529_s13, %s3058_s13   ;;  %s2449_s12 = sphi %s2527_s12, %s3057_s12   ;;  %s2445_s11 = sphi %s2525_s11, %s3056_s11   ;;  %s2441_s10 = sphi %s2523_s10, %s3062_s10   ;;  %s2437_s30 = sphi %s2521_s30, %s3061_s30  }
   0x6   : > { %3046 = sst [smem:[#allocation6_spill]] %s2457_s14  ;;  %s1881_s18 = sadd.s32 4294967294, %s2465_s16  }
   0x7   : > { %3047 = sst [smem:[#allocation7_spill]] %s2461_s15  ;;  %s31_s19 = sadd.s32 1, %s2457_s14 }
   0x8   : > { %p32_p0 = scmp.ge.s32.totalorder %s31_s19, 4  ;;  %s34_s20 = sadd.s32 1, %s2461_s15 }
   0x9   : > { %p263_p1 = scmp.ne.s32.totalorder %s2445_s11, %s2441_s10  ;;  %p264_p2 = scmp.eq.s32.totalorder %s1880_s17, 7 }
   0xa   : > { %s3064_s19 = smov (%p32_p0, %s31_s19), 0  ;;  %s3066_s20 = smov (!%p32_p0, %s34_s20), %s2461_s15 }
   0xb   : > { %3048 = sst [smem:[#allocation8_spill]] %s3064_s19  ;;  %s249_s21 = ssub.s32 %s2457_s14, %s3064_s19 }
   0xc   : > { %p2572_p3 = por %p264_p2, %p263_p1  ;;  %p36_p4 = scmp.ge.s32.totalorder %s3066_s20, 2 }
   0xd   : > { %p269_p5 = scmp.ne.s32.totalorder %s2441_s10, %s2437_s30  ;;  %p270_p6 = scmp.eq.s32.totalorder %s1881_s18, 7 }
   0xe   : > { %p1884_p7 = scmp.ge.s32.totalorder %s2465_s16, 1  ;;  %s3068_s20 = smov (%p36_p4, %s3066_s20), 0 }
   0xf   : > { %3050 = sst [smem:[#allocation9_spill]] %s3068_s20  ;;  %p2581_p8 = por %p270_p6, %p269_p5 }
  0x10   : > { %p342_p9 = scmp.lt.s32.totalorder %s2465_s16, 9  ;;  %s248_s24 = ssub.s32 %s2461_s15, %s3068_s20 }
  0x11   : > { %s3051_s23 = scalar_select %p2581_p8, 1, 0 }
  0x12   : > { %s253_s25 = sadd.s32 1, %s2445_s11  ;;  %s250_s26 = sor.u32 %s249_s21, %s248_s24 }
  0x13   : > { %3052 = sst [smem:[#allocation10_spill]] %s3051_s23  ;;  %p343_p10 = pnand %p1884_p7, %p342_p9 }
  0x14   : > { %p251_p11 = scmp.eq.s32.totalorder %s250_s26, 0  ;;  %v2291_v0 = vld [vmem:[%s3032_s3] sm:$0xff] (!%p343_p10)   ;;  %v2467_v1 = vmov (!%p343_p10), 0.0   ;;  %vm2468_vm0 = vmmov (!%p343_p10), 0   ;;  %v2294_v4 = vld [vmem:[%s3032_s3 + $0x8] sm:$0xff] (!%p343_p10)   ;;  %p399_p12 = scmp.lt.s32.totalorder (!%p343_p10), %s2453_s13, 1 }
  0x15   : > { %346 = sbr.rel (%p343_p10) target bundleno = 1034 (0x40a), region = 56  ;;  %2087 = vmatprep.subr.bf16.mxu0 (!%p343_p10), %v2467_v1  ;;  %v2292_v2 = vld [vmem:[%s3033_s4 + $0x40] sm:$0xff] (!%p343_p10)   ;;  %2103 = vmatprep.mubr.msk.bf16.mxu0 (!%p343_p10), %vm2468_vm0, %v2467_v1  ;;  %v2295_v5 = vld [vmem:[%s3033_s4 + $0x48] sm:$0xff] (!%p343_p10)   ;;  %v2297_v7 = vld [vmem:[%s3032_s3 + $0x10] sm:$0xff] (!%p343_p10)   ;;  %p401_p13 = scmp.lt.s32.totalorder (!%p343_p10), %s2449_s12, 3  ;;  %vm1437_vm1 = vcmask (!%p343_p10), 1043456  }
  0x16   : > { %s2590_s27 = scalar_select %p251_p11, %s2445_s11, %s253_s25  }
  0x17   : > { %2088 = vmatpush3.bf16.msra.mxu0 (!%p343_p10), %v2291_v0  ;;  %v2293_v3 = vld [vmem:[%s3033_s4] sm:$0xff] (!%p343_p10)   ;;  %1965 = vmatprep.subr.bf16.mxu1 (!%p343_p10), %v2292_v2  ;;  %v2296_v6 = vld [vmem:[%s3033_s4 + $0x8] sm:$0xff] (!%p343_p10)   ;;  %v2298_v8 = vld [vmem:[%s3033_s4 + $0x50] sm:$0xff] (!%p343_p10)   ;;  %s1888_s28 = sshll.u32 (!%p343_p10), %s2449_s12, 3  ;;  %vm1251_vm3 = vcmask (!%p343_p10), 31744   ;;  %vm1642_vm11 = vcmask (!%p343_p10), 1041409  }
  0x18   : > { %3053 = sst [smem:[#allocation11_spill]] %s2590_s27  ;;  %2089 = vmatprep.subr.bf16.mxu0 (!%p343_p10), %v2467_v1  ;;  %1966 = vmatpush3.bf16.msra.mxu1 (!%p343_p10), %v2293_v3  ;;  %v2299_v9 = vld [vmem:[%s3033_s4 + $0x10] sm:$0xff] (!%p343_p10)   ;;  %v2300_v10 = vld [vmem:[%s3032_s3 + $0x18] sm:$0xff] (!%p343_p10)   ;;  %p410_p0 = scmp.lt.s32.totalorder (!%p343_p10), %s1888_s28, 31  ;;  %v2304_v13 = vld [vmem:[%s3033_s4 + $0x60] sm:$0xff] (!%p343_p10)   ;;  %vm1644_vm12 = vcmask (!%p343_p10), 1042434  }
  0x19   : > { %1967 = vmatprep.subr.bf16.mxu1 (!%p343_p10), %v2295_v5  ;;  %v2301_v11 = vld [vmem:[%s3033_s4 + $0x58] sm:$0xff] (!%p343_p10)   ;;  %v2303_v14 = vld [vmem:[%s3032_s3 + $0x20] sm:$0xff] (!%p343_p10)   ;;  %v2307_v16 = vld [vmem:[%s3033_s4 + $0x68] sm:$0xff] (!%p343_p10)   ;;  %vm1646_vm13 = vcmask (!%p343_p10), 1043459   ;;  %vm1648_vm14 = vcmask (!%p343_p10), 1044484   ;;  %vm1650_vm15 = vcmask (!%p343_p10), 1045509  }
  0x1a   : > { %v2302_v12 = vld [vmem:[%s3033_s4 + $0x18] sm:$0xff] (!%p343_p10)   ;;  %v2305_v15 = vld [vmem:[%s3033_s4 + $0x20] sm:$0xff] (!%p343_p10)   ;;  %v2306_v17 = vld [vmem:[%s3032_s3 + $0x28] sm:$0xff] (!%p343_p10)   ;;  %s396_s20 = sand.u32 (!%p343_p10), 1, %s2441_s10  }
  0x1b   : > { %2090 = vmatpush3.bf16.msra.mxu0 (!%p343_p10), %v2294_v4  ;;  %v2308_v18 = vld [vmem:[%s3033_s4 + $0x28] sm:$0xff] (!%p343_p10)   ;;  %v2310_v19 = vld [vmem:[%s3033_s4 + $0x70] sm:$0xff] (!%p343_p10)   ;;  %v2313_v23 = vld [vmem:[%s3033_s4 + $0x78] sm:$0xff] (!%p343_p10)   ;;  %s1885_s14 = sshll.u32 (!%p343_p10), %s396_s20, 3 }
  0x1c   : > { %2091 = vmatprep.subr.bf16.mxu0 %v2467_v1  ;;  %1968 = vmatpush3.bf16.msra.mxu1 %v2296_v6  ;;  %s400_s17 = scalar_select %p399_p12, %s2453_s13, 1  ;;  %v2309_v20 = vld [vmem:[%s3032_s3 + $0x30] sm:$0xff]   ;;  %v2312_v25 = vld [vmem:[%s3032_s3 + $0x38] sm:$0xff]   ;;  %v1041_v34 = vld [vmem:[%s3036_s7] sm:$0xff] }
  0x1d   : > { %1969 = vmatprep.subr.bf16.mxu1 %v2298_v8  ;;  %s402_s25 = scalar_select %p401_p13, %s2449_s12, 3  ;;  %v2311_v21 = vld [vmem:[%s3033_s4 + $0x30] sm:$0xff]   ;;  %v2314_v28 = vld [vmem:[%s3033_s4 + $0x38] sm:$0xff]   ;;  %v1042_v35 = vld [vmem:[%s3036_s7 + $0x8] sm:$0xff] }
  0x1e   : > { %s3070_s28 = smov (!%p410_p0, %s1888_s28), 31  ;;  %s1890_s29 = sshll.u32 %s400_s17, 6  ;;  %v1043_v36 = vld [vmem:[%s3036_s7 + $0x10] sm:$0xff]  ;;  %v2185_v38 = vpack.c.bf16 %v1042_v35, %v1041_v34  ;;  %v1044_v39 = vld [vmem:[%s3036_s7 + $0x18] sm:$0xff]  ;;  %v1045_v42 = vld [vmem:[%s3036_s7 + $0x20] sm:$0xff] }
  0x1f   : > { %2092 = vmatpush3.bf16.msra.mxu0 %v2297_v7  ;;  %s1889_s18 = sshll.u32 %s3070_s28, 1  ;;  %s1886_s24 = sshll.u32 %s400_s17, 2  ;;  %v2189_v41 = vpack.c.bf16 %v1044_v39, %v1043_v36  ;;  %v1046_v43 = vld [vmem:[%s3036_s7 + $0x28] sm:$0xff]  ;;  %v1047_v48 = vld [vmem:[%s3036_s7 + $0x30] sm:$0xff]  ;;  %v1048_v49 = vld [vmem:[%s3036_s7 + $0x38] sm:$0xff] }
  0x20   : > { %2093 = vmatprep.subr.bf16.mxu0 %v2467_v1  ;;  %1970 = vmatpush3.bf16.msra.mxu1 %v2299_v9  ;;  %s414_s27 = sadd.s32 %s1890_s29, %s1889_s18  ;;  %s2652_s15 = sadd.s32 %s1886_s24, %s402_s25  ;;  %v2193_v50 = vpack.c.bf16 %v1046_v43, %v1045_v42  ;;  %v1049_v53 = vld [vmem:[%s3036_s7 + $0x40] sm:$0xff]  ;;  %v1050_v54 = vld [vmem:[%s3036_s7 + $0x48] sm:$0xff]  ;;  %v2197_v55 = vpack.c.bf16 %v1048_v49, %v1047_v48  ;;  %v1051_v60 = vld [vmem:[%s3036_s7 + $0x50] sm:$0xff] }
  0x21   : > { %1971 = vmatprep.subr.bf16.mxu1 %v2301_v11  ;;  %s1891_s17 = sshll.u32 %s414_s27, 3  ;;  %s1887_s19 = sshll.u32 %s2652_s15, 3  ;;  %v1052_v61 = vld [vmem:[%s3036_s7 + $0x58] sm:$0xff]  ;;  %v2201_v62 = vpack.c.bf16 %v1050_v54, %v1049_v53  ;;  %v1053_v6 = vld [vmem:[%s3036_s7 + $0x60] sm:$0xff]  ;;  %v1054_v7 = vld [vmem:[%s3036_s7 + $0x68] sm:$0xff] }
  0x22   : > { %s2668_s24 = scalar_lea.vmem %s3030_s1, %s1891_s17  ;;  %s406_s28 = scalar_lea.vmem %s3029_s0, %s1887_s19  ;;  %v2205_v2 = vpack.c.bf16 %v1052_v61, %v1051_v60  ;;  %v2209_v8 = vpack.c.bf16 %v1054_v7, %v1053_v6  ;;  %v1055_v9 = vld [vmem:[%s3036_s7 + $0x70] sm:$0xff] }
  0x23   : > { %2094 = vmatpush3.bf16.msra.mxu0 %v2300_v10  ;;  %v430_v22 = vld [vmem:[%s2668_s24 + $0x8] sm:$0xff]  ;;  %v432_v24 = vld [vmem:[%s2668_s24 + $0x18] sm:$0xff]  ;;  %v427_v26 = vld [vmem:[%s406_s28] sm:$0xff]  ;;  %s425_s18 = scalar_lea.vmem %s3031_s2, %s1887_s19  ;;  %s1952_s28 = sshll.u32 %s2453_s13, 2 }
  0x24   : > { %2095 = vmatprep.subr.bf16.mxu0 %v2467_v1  ;;  %1972 = vmatpush3.bf16.msra.mxu1 %v2302_v12  ;;  %v446_v27 = vpack.c.bf16 %v432_v24, %v430_v22  ;;  %v429_v29 = vld [vmem:[%s2668_s24] sm:$0xff]  ;;  %v431_v30 = vld [vmem:[%s2668_s24 + $0x10] sm:$0xff]  ;;  %v428_v31 = vpack.c.bf16 %v427_v26, %v427_v26  ;;  %v434_v32 = vld [vmem:[%s2668_s24 + $0x28] sm:$0xff]  ;;  %v948_v12 = vlaneseq  ;;  %s398_s11 = scalar_lea.vmem [#allocation2], %s1885_s14  ;;  %s1748_s15 = scalar_lea.sflag [#allocation3], %s396_s20 }
  0x25   : > { %1973 = vmatprep.subr.bf16.mxu1 %v2304_v13  ;;  %v436_v33 = vld [vmem:[%s2668_s24 + $0x38] sm:$0xff]  ;;  %v2707_v37 = vpack.c.bf16 %v431_v30, %v429_v29  ;;  %v433_v44 = vld [vmem:[%s2668_s24 + $0x20] sm:$0xff]  ;;  %v435_v45 = vld [vmem:[%s2668_s24 + $0x30] sm:$0xff]  ;;  %s1763_s17 = sshll.u32 %s398_s11, 4  ;;  %s2973_s17 = int_to_ptr.vmem [resolvable:$true] %s1763_s17 }
  0x26   : > { %717 = vmatprep.mubr.bf16.mxu1 %v446_v27  ;;  %v2712_v40 = vpack.c.bf16 %v436_v33, %v434_v32  ;;  %v438_v46 = vld [vmem:[%s2668_s24 + $0x48] sm:$0xff]  ;;  %v440_v47 = vld [vmem:[%s2668_s24 + $0x58] sm:$0xff]  ;;  %v2732_v51 = vpack.c.bf16 %v435_v45, %v433_v44  ;;  %v437_v56 = vld [vmem:[%s2668_s24 + $0x40] sm:$0xff]  ;;  %v949_v13 = vshrl.u32 %v948_v12, 7  ;;  %s2371_s13 = scalar_lea.vmem %s2973_s17, 128 }
  0x27   : > { %2096 = vmatpush3.bf16.msra.mxu0 %v2303_v14  ;;  %v2734_v52 = vpack.c.bf16 %v440_v47, %v438_v46  ;;  %v439_v57 = vld [vmem:[%s2668_s24 + $0x50] sm:$0xff]  ;;  %v442_v58 = vld [vmem:[%s2668_s24 + $0x68] sm:$0xff]  ;;  %v444_v59 = vld [vmem:[%s2668_s24 + $0x78] sm:$0xff]  ;;  %p2372_p1 = scmp.ne.s32.totalorder %s2973_s17, %s2371_s13 }
  0x28   : > { %2097 = vmatprep.subr.bf16.mxu0 %v2467_v1  ;;  %1974 = vmatpush3.bf16.msra.mxu1 %v2305_v15  ;;  %v2754_v63 = vpack.c.bf16 %v439_v57, %v437_v56  ;;  %v2756_v0 = vpack.c.bf16 %v444_v59, %v442_v58  ;;  %v441_v3 = vld [vmem:[%s2668_s24 + $0x60] sm:$0xff]  ;;  %v443_v4 = vld [vmem:[%s2668_s24 + $0x70] sm:$0xff]  ;;  %v1056_v10 = vld [vmem:[%s3036_s7 + $0x78] sm:$0xff]  ;;  %v2782_v15 = vsub.s32 0, %v949_v13  ;;  %v1193_v22 = vsub.s32 4, %v949_v13  ;;  %s1759_s24 = sadd.s32 %s2449_s12, %s1952_s28  ;;  %s2470_s12 = smov [#allocation2]  }
  0x29   : > { %1975 = vmatprep.subr.bf16.mxu1 %v2307_v16  ;;  %v2762_v5 = vpack.c.bf16 %v443_v4, %v441_v3  ;;  %v2213_v11 = vpack.c.bf16 %v1056_v10, %v1055_v9  ;;  %v1162_v14 = vld [vmem:[%s425_s18] sm:$0xff]  ;;  %v1200_v24 = vsub.s32 5, %v949_v13  ;;  %v1207_v26 = vsub.s32 6, %v949_v13  ;;  %s1953_s29 = sshll.u32 %s1759_s24, 7  ;;  %p2373_p2 = pnand %p2372_p1, %p2572_p3 }
  0x2a   : > { %v1166_v16 = vrot.slane %v1162_v14, %v2782_v15  ;;  %s2978_s18 = scalar_lea.hbm %s3038_s9, %s1953_s29  ;;  %s2375_s19 = sshll.u32 %s2470_s12, 4  ;;  %s2376_s19 = int_to_ptr.vmem [resolvable:$false] %s2375_s19 }
  0x2b   : > { %2098 = vmatpush3.bf16.msra.mxu0 %v2306_v17  ;;  %v1172_v17 = vsub.s32 1, %v949_v13  ;;  %v1208_v29 = vrot.slane %v1162_v14, %v1207_v26  ;;  %p2374_p4 = pneg %p2373_p2  ;;  %s2377_s21 = scalar_lea.vmem %s2376_s19, 256 }
  0x2c   : > { %2099 = vmatprep.subr.bf16.mxu0 %v2467_v1  ;;  %1976 = vmatpush3.bf16.msra.mxu1 %v2308_v18  ;;  %v1179_v18 = vsub.s32 2, %v949_v13  ;;  %p2378_p5 = scmp.lt.s32.totalorder %s2973_s17, %s2376_s19  ;;  %p2379_p6 = scmp.lt.s32.totalorder %s2377_s21, %s2371_s13 }
  0x2d   : > { %1977 = vmatprep.subr.bf16.mxu1 %v2310_v19  ;;  %v1186_v19 = vsub.s32 3, %v949_v13  ;;  %1168 = vbcast.lane.b32.xlu0 %v1166_v16, 256 }
  0x2e   : > { %p2380_p7 = por %p2379_p6, %p2378_p5 }
  0x2f   : > { %2100 = vmatpush3.bf16.msra.mxu0 %v2309_v20  ;;  %v1173_v20 = vrot.slane %v1162_v14, %v1172_v17 }
  0x30   : > { %2101 = vmatprep.subr.bf16.mxu0 %v2467_v1  ;;  %1978 = vmatpush3.bf16.msra.mxu1 %v2311_v21  ;;  %v1180_v21 = vrot.slane %v1162_v14, %v1179_v18  ;;  %p2381_p9 = pnand %p2380_p7, %p2374_p4 }
  0x31   : > { %1979 = vmatprep.subr.bf16.mxu1 %v2313_v23  ;;  %v1187_v23 = vrot.slane %v1162_v14, %v1186_v19  ;;  %1175 = vbcast.lane.b32.xlu0 %v1173_v20, 256 }
  0x32   : > { %1182 = vbcast.lane.b32.xlu1 %v1180_v21, 256 }
  0x33   : > { %2102 = vmatpush3.bf16.msra.mxu0 %v2312_v25  ;;  %v1194_v25 = vrot.slane %v1162_v14, %v1193_v22 }
  0x34   : > { %1980 = vmatpush3.bf16.msra.mxu1 %v2314_v28  ;;  %v1214_v28 = vsub.s32 7, %v949_v13 }
  0x35   : > { %2186 = vmatprep.subr.bf16.mxu1 %v2185_v38  ;;  %1196 = vbcast.lane.b32.xlu0 %v1194_v25, 256 }
  0x36   : > { %2104 = vmatmul.mubr.bf16.vlgmr.msra.gmra.mrb[0].mxu0 %v428_v31  ;;  %1189 = vbcast.lane.b32.xlu1 %v1187_v23, 256  ;;  %v1215_v30 = vrot.slane %v1162_v14, %v1214_v28  ;;  %v2469_v31 = vmov 1966171168  }
  0x37   : > { %910 = vmatprep.mubr.bf16.mxu0 %v446_v27  ;;  %718 = vmatmul.mubr.bf16.vlgmr.msra.gmra.mrb[0].mxu1 %v2707_v37  ;;  %v1201_v27 = vrot.slane %v1162_v14, %v1200_v24  ;;  %v946_v32 = vunpack.c.l.s4 %v2469_v31 }
  0x38   : > { %725 = vmatprep.mubr.bf16.mxu1 %v2712_v40  ;;  %2188 = vmatpush3.bf16.msra.mxu1 %v2185_v38 }
  0x39   : > { %2190 = vmatprep.subr.bf16.mxu1 %v2189_v41  ;;  %1210 = vbcast.lane.b32.xlu0 %v1208_v29, 256  ;;  %v947_v33 = vunpack.c.0.s8 %v946_v32 }
  0x3a   : > { %1203 = vbcast.lane.b32.xlu1 %v1201_v27, 256 }
  0x3b   : > { %v950_v34 = vsub.s32 %v947_v33, %v949_v13 }
  0x3c   : > { %2192 = vmatpush3.bf16.msra.mxu1 %v2189_v41 }
  0x3d   : > { %2194 = vmatprep.subr.bf16.mxu1 %v2193_v50 }
  0x3e   : > { %1217 = vbcast.lane.b32.xlu1 %v1215_v30, 256 }
  0x3f   : > { %726 = vmatmul.mubr.bf16.gmra.mrb[4].mxu1 %v2732_v51 }
  0x40   : > { %733 = vmatprep.mubr.bf16.mxu1 %v2734_v52  ;;  %2196 = vmatpush3.bf16.msra.mxu1 %v2193_v50 }
  0x41   : > { %2198 = vmatprep.subr.bf16.mxu1 %v2197_v55 }
  0x44   : > { %2200 = vmatpush3.bf16.msra.mxu1 %v2197_v55 }
  0x45   : > { %2202 = vmatprep.subr.bf16.mxu1 %v2201_v62 }
  0x47   : > { %734 = vmatmul.mubr.bf16.gmra.mrb[8].mxu1 %v2754_v63 }
  0x48   : > { %741 = vmatprep.mubr.bf16.mxu1 %v2756_v0  ;;  %2204 = vmatpush3.bf16.msra.mxu1 %v2201_v62 }
  0x49   : > { %2206 = vmatprep.subr.bf16.mxu1 %v2205_v2 }
  0x4c   : > { %2208 = vmatpush3.bf16.msra.mxu1 %v2205_v2 }
  0x4d   : > { %2210 = vmatprep.subr.bf16.mxu1 %v2209_v8 }
  0x4f   : > { %742 = vmatmul.mubr.bf16.gmra.mrb[12].mxu1 %v2762_v5 }
  0x50   : > { %2212 = vmatpush3.bf16.msra.mxu1 %v2209_v8 }
  0x51   : > { %2214 = vmatprep.subr.bf16.mxu1 %v2213_v11 }
  0x54   : > { %2216 = vmatpush3.bf16.msra.mxu1 %v2213_v11 }
 0x109   : > { %v551_v35 = vpop.f32.mrb[0].mxu0 }
 0x10a   : > { %v944_v36 = vcombine.high %v551_v35, %v551_v35  ;;  %v951_v38 = vrot.slane %v551_v35, %v950_v34  ;;  %v2105_v39 = vpop.f32.mrb[1].mxu0  ;;  %v1981_v41 = vpop.f32.mrb[0].mxu1 }
 0x10b   : > { %v554_v42 = vpop.f32.mrb[2].mxu0  ;;  %v1982_v46 = vpop.f32.mrb[1].mxu1  ;;  %v2316_v39 = vld [vmem:[%s3034_s5] sm:$0xff]  }
 0x10c   : > { %v958_v43 = vrot.slane %v944_v36, %v950_v34  ;;  %v959_v44 = vcombine.high %v951_v38, %v951_v38  ;;  %v967_v45 = vrot.slane %v951_v38, %v950_v34  ;;  %v2106_v47 = vpop.f32.mrb[3].mxu0  ;;  %v1983_v48 = vadd.f32 %v1982_v46, %v1981_v41  ;;  %v1984_v49 = vpop.f32.mrb[2].mxu1  ;;  %v2315_v38 = vld [vmem:[%s3034_s5 + $0x40] sm:$0xff]   ;;  %v2317_v41 = vld [vmem:[%s3034_s5 + $0x48] sm:$0xff]   ;;  %v2319_v42 = vld [vmem:[%s3034_s5 + $0x50] sm:$0xff]  }
 0x10d   : > { %v1985_v55 = vpop.f32.mrb[3].mxu1  ;;  %2005 = vmatprep.subr.bf16.mxu0 %v2315_v38  ;;  %v2323_v46 = vld [vmem:[%s3034_s5 + $0x60] sm:$0xff]  }
 0x10e   : > { %v960_v50 = vcombine.high %v958_v43, %v958_v43  ;;  %v974_v53 = vrot.slane %v958_v43, %v950_v34  ;;  %v981_v54 = vrot.slane %v959_v44, %v950_v34  ;;  %v989_v56 = vcombine.high %v967_v45, %v967_v45  ;;  %2006 = vmatpush3.bf16.msra.mxu0 %v2316_v39  ;;  %v2320_v43 = vld [vmem:[%s3034_s5 + $0x10] sm:$0xff]   ;;  %v2321_v44 = vld [vmem:[%s3034_s5 + $0x58] sm:$0xff]   ;;  %v2324_v47 = vld [vmem:[%s3034_s5 + $0x20] sm:$0xff]  }
 0x10f   : > { %v996_v57 = vrot.slane %v967_v45, %v2782_v15  ;;  %v1986_v58 = vadd.f32 %v1985_v55, %v1984_v49  ;;  %2007 = vmatprep.subr.bf16.mxu0 %v2317_v41  ;;  %v2322_v45 = vld [vmem:[%s3034_s5 + $0x18] sm:$0xff]   ;;  %v2326_v49 = vld [vmem:[%s3034_s5 + $0x28] sm:$0xff]  }
 0x110   : > { %v1000_v59 = vrot.slane %v981_v54, %v2782_v15  ;;  %v991_v61 = vcombine.high %v981_v54, %v981_v54  ;;  %v988_v62 = vrot.slane %v960_v50, %v950_v34  ;;  %v1004_v4 = vrot.slane %v989_v56, %v2782_v15  ;;  %v2327_v50 = vld [vmem:[%s3034_s5 + $0x70] sm:$0xff]   ;;  %v2329_v54 = vld [vmem:[%s3034_s5 + $0x78] sm:$0xff]   ;;  %v1412_v56 = vld [vmem:[%s3037_s8] sm:$0xf] }
 0x111   : > { %v1033_v60 = vmul.f32 %v1983_v48, %v996_v57  ;;  %v1012_v18 = vrot.slane %v974_v53, %v2782_v15  ;;  %v990_v25 = vcombine.high %v974_v53, %v974_v53  ;;  %v2325_v48 = vld [vmem:[%s3034_s5 + $0x68] sm:$0xff]   ;;  %v2328_v53 = vld [vmem:[%s3034_s5 + $0x30] sm:$0xff]   ;;  %v2330_v55 = vld [vmem:[%s3034_s5 + $0x38] sm:$0xff]   ;;  %2151 = vmatprep.subr.msk.mxu1 %vm1437_vm1, %v1412_v56  ;;  %v2858_v57 = vpop.permute.xlu1 %1182 }
 0x112   : > { %v1034_v2 = vmul.f32 %v1986_v58, %v1000_v59  ;;  %v1987_v3 = vpop.f32.mrb[4].mxu1  ;;  %v1008_v9 = vrot.slane %v991_v61, %v2782_v15  ;;  %v1016_v23 = vrot.slane %v988_v62, %v2782_v15  ;;  %v992_v27 = vcombine.high %v988_v62, %v988_v62 }
 0x113   : > { %2139 = vmatprep.mubr.f32.mxu1 %v1033_v60  ;;  %v1988_v6 = vpop.f32.mrb[5].mxu1  ;;  %v1020_v30 = vrot.slane %v990_v25, %v2782_v15  ;;  %vm1221_vm6 = vcmp.gt.f32.partialorder %v2858_v57, 0.0 }
 0x114   : > { %2140 = vmatmul.mubr.f32.vlgmr.msra.gmra.mrb[16].mxu1 %v1034_v2  ;;  %v1989_v7 = vadd.f32 %v1988_v6, %v1987_v3  ;;  %v1990_v8 = vpop.f32.mrb[6].mxu1  ;;  %v1024_v35 = vrot.slane %v992_v27, %v2782_v15  ;;  %v2318_v15 = vld [vmem:[%s3034_s5 + $0x8] sm:$0xff]  }
 0x115   : > { %v1991_v10 = vpop.f32.mrb[7].mxu1  ;;  %2008 = vmatpush3.bf16.msra.mxu0 %v2318_v15  ;;  %2152 = vmatpush3.msk.msra.mxu1 %vm1437_vm1, %v1412_v56  ;;  %v2863_v58 = vpop.permute.xlu1 %1189  ;;  %vm1654_vm1 = vcmask 1047559  }
 0x116   : > { %v1035_v11 = vmul.f32 %v1989_v7, %v1004_v4  ;;  %v1992_v12 = vadd.f32 %v1991_v10, %v1990_v8  ;;  %2009 = vmatprep.subr.bf16.mxu0 %v2319_v42  ;;  %vm1222_vm5 = vcmp.gt.f32.partialorder %v2863_v58, 0.0 }
 0x118   : > { %v1036_v13 = vmul.f32 %v1992_v12, %v1008_v9  ;;  %2142 = vmatprep.mubr.f32.mxu1 %v1035_v11 }
 0x119   : > { %2010 = vmatpush3.bf16.msra.mxu0 %v2320_v43 }
 0x11a   : > { %v1993_v14 = vpop.f32.mrb[8].mxu1  ;;  %2143 = vmatmul.mubr.f32.gmra.mrb[18].mxu1 %v1036_v13  ;;  %2011 = vmatprep.subr.bf16.mxu0 %v2321_v44 }
 0x11b   : > { %v1994_v16 = vpop.f32.mrb[9].mxu1 }
 0x11c   : > { %v1995_v17 = vadd.f32 %v1994_v16, %v1993_v14  ;;  %v1996_v19 = vpop.f32.mrb[10].mxu1  ;;  %v2870_v16 = vpop.permute.xlu1 %1203 }
 0x11d   : > { %v1997_v20 = vpop.f32.mrb[11].mxu1  ;;  %2012 = vmatpush3.bf16.msra.mxu0 %v2322_v45  ;;  %vm1224_vm7 = vcmp.gt.f32.partialorder %v2870_v16, 0.0 }
 0x11e   : > { %v1037_v21 = vmul.f32 %v1995_v17, %v1012_v18  ;;  %v1998_v22 = vadd.f32 %v1997_v20, %v1996_v19  ;;  %2013 = vmatprep.subr.bf16.mxu0 %v2323_v46 }
 0x120   : > { %v1038_v24 = vmul.f32 %v1998_v22, %v1016_v23  ;;  %2145 = vmatprep.mubr.f32.mxu1 %v1037_v21  ;;  %v2878_v42 = vpop.permute.xlu1 %1217 }
 0x121   : > { %2014 = vmatpush3.bf16.msra.mxu0 %v2324_v47  ;;  %vm1226_vm9 = vcmp.gt.f32.partialorder %v2878_v42, 0.0 }
 0x122   : > { %v1999_v26 = vpop.f32.mrb[12].mxu1  ;;  %2146 = vmatmul.mubr.f32.gmra.mrb[20].mxu1 %v1038_v24  ;;  %2015 = vmatprep.subr.bf16.mxu0 %v2325_v48 }
 0x123   : > { %v2000_v28 = vpop.f32.mrb[13].mxu1 }
 0x124   : > { %v2001_v29 = vadd.f32 %v2000_v28, %v1999_v26  ;;  %v2002_v31 = vpop.f32.mrb[14].mxu1 }
 0x125   : > { %v2003_v32 = vpop.f32.mrb[15].mxu1  ;;  %2016 = vmatpush3.bf16.msra.mxu0 %v2326_v49 }
 0x126   : > { %v1039_v33 = vmul.f32 %v2001_v29, %v1020_v30  ;;  %v2004_v34 = vadd.f32 %v2003_v32, %v2002_v31  ;;  %2017 = vmatprep.subr.bf16.mxu0 %v2327_v50 }
 0x128   : > { %v1040_v36 = vmul.f32 %v2004_v34, %v1024_v35  ;;  %2148 = vmatprep.mubr.f32.mxu1 %v1039_v33 }
 0x129   : > { %2018 = vmatpush3.bf16.msra.mxu0 %v2328_v53 }
 0x12a   : > { %2149 = vmatmul.mubr.f32.gmra.mrb[22].mxu1 %v1040_v36  ;;  %2019 = vmatprep.subr.bf16.mxu0 %v2329_v54 }
 0x12d   : > { %2020 = vmatpush3.bf16.msra.mxu0 %v2330_v55 }
 0x12e   : > { %2165 = vmatprep.subr.bf16.mxu0 %v2467_v1 }
 0x130   : > { %911 = vmatmul.mubr.bf16.vlgmr.msra.gmra.mrb[4].mxu0 %v2707_v37  ;;  %v2854_v37 = vpop.permute.xlu0 %1168 }
 0x131   : > { %918 = vmatprep.mubr.bf16.mxu0 %v2712_v40  ;;  %vm1219_vm4 = vcmp.gt.f32.partialorder %v2854_v37, 0.0 }
 0x134   : > { %v2856_v40 = vpop.permute.xlu0 %1175 }
 0x135   : > { %vm1220_vm2 = vcmp.gt.f32.partialorder %v2856_v40, 0.0 }
 0x138   : > { %919 = vmatmul.mubr.bf16.gmra.mrb[8].mxu0 %v2732_v51  ;;  %v2872_v19 = vpop.permute.xlu0 %1196 }
 0x139   : > { %926 = vmatprep.mubr.bf16.mxu0 %v2734_v52  ;;  %vm1223_vm8 = vcmp.gt.f32.partialorder %v2872_v19, 0.0 }
 0x13c   : > { %v2880_v45 = vpop.permute.xlu0 %1210 }
 0x13d   : > { %vm1225_vm10 = vcmp.gt.f32.partialorder %v2880_v45, 0.0 }
 0x140   : > { %927 = vmatmul.mubr.bf16.gmra.mrb[12].mxu0 %v2754_v63 }
 0x141   : > { %934 = vmatprep.mubr.bf16.mxu0 %v2756_v0 }
 0x148   : > { %935 = vmatmul.mubr.bf16.gmra.mrb[16].mxu0 %v2762_v5 }
 0x149   : > { %2181 = vmatprep.mubr.msk.bf16.mxu0 %vm2468_vm0, %v2467_v1  ;;  %vm1652_vm0 = vcmask 1046534  }
 0x1e7   : > { %v2141_v51 = vpop.f32.mrb[16].mxu1 }
 0x1e8   : > { %v1244_v52 = vsel %vm1220_vm2, %v2141_v51, -3.4028235e+38  ;;  %v1123_v63 = vpop.f32.mrb[17].mxu1 }
 0x1e9   : > { %v1259_v0 = vsel %vm1251_vm3, %v1244_v52, -inf  ;;  %v1243_v5 = vsel %vm1219_vm4, %v1123_v63, -3.4028235e+38 }
 0x1ea   : > { %v1260_v59 = vrot.slane %v1259_v0, 4  ;;  %v1252_v60 = vsel %vm1251_vm3, %v1243_v5, -inf }
 0x1eb   : > { %v1253_v61 = vrot.slane %v1252_v60, 4 }
 0x1ec   : > { %v1261_v62 = vmax.f32 %v1259_v0, %v1260_v59 }
 0x1ed   : > { %v1254_v2 = vmax.f32 %v1252_v60, %v1253_v61  ;;  %v2144_v4 = vpop.f32.mrb[18].mxu1 }
 0x1ee   : > { %v1262_v3 = vrot.slane %v1261_v62, 2  ;;  %v1246_v7 = vsel %vm1222_vm5, %v2144_v4, -3.4028235e+38  ;;  %v1133_v8 = vpop.f32.mrb[19].mxu1 }
 0x1ef   : > { %v1255_v6 = vrot.slane %v1254_v2, 2  ;;  %v1273_v10 = vsel %vm1251_vm3, %v1246_v7, -inf  ;;  %v1245_v11 = vsel %vm1221_vm6, %v1133_v8, -3.4028235e+38 }
 0x1f0   : > { %v1263_v9 = vmax.f32 %v1261_v62, %v1262_v3  ;;  %v1274_v13 = vrot.slane %v1273_v10, 4  ;;  %v1266_v14 = vsel %vm1251_vm3, %v1245_v11, -inf }
 0x1f1   : > { %v1256_v12 = vmax.f32 %v1254_v2, %v1255_v6  ;;  %v1267_v18 = vrot.slane %v1266_v14, 4 }
 0x1f2   : > { %v1264_v17 = vrot.slane %v1263_v9, 1  ;;  %v1275_v21 = vmax.f32 %v1273_v10, %v1274_v13 }
 0x1f3   : > { %v1257_v20 = vrot.slane %v1256_v12, 1  ;;  %v1268_v23 = vmax.f32 %v1266_v14, %v1267_v18 }
 0x1f4   : > { %v1265_v22 = vmax.f32 %v1263_v9, %v1264_v17  ;;  %v1276_v25 = vrot.slane %v1275_v21, 2 }
 0x1f5   : > { %v1258_v24 = vmax.f32 %v1256_v12, %v1257_v20  ;;  %v1269_v27 = vrot.slane %v1268_v23, 2  ;;  %v2147_v28 = vpop.f32.mrb[20].mxu1 }
 0x1f6   : > { %v1309_v26 = vsub.f32 %v1244_v52, %v1265_v22  ;;  %v1277_v30 = vmax.f32 %v1275_v21, %v1276_v25  ;;  %v1248_v31 = vsel %vm1224_vm7, %v2147_v28, -3.4028235e+38  ;;  %v1143_v32 = vpop.f32.mrb[21].mxu1 }
 0x1f7   : > { %v1308_v29 = vsub.f32 %v1243_v5, %v1258_v24  ;;  %v1270_v34 = vmax.f32 %v1268_v23, %v1269_v27  ;;  %v1287_v35 = vsel %vm1251_vm3, %v1248_v31, -inf  ;;  %v1247_v36 = vsel %vm1223_vm8, %v1143_v32, -3.4028235e+38 }
 0x1f8   : > { %v1318_v33 = vmul.f32 1.442695, %v1309_v26  ;;  %v1278_v39 = vrot.slane %v1277_v30, 1  ;;  %v1288_v41 = vrot.slane %v1287_v35, 4  ;;  %v1280_v15 = vsel %vm1251_vm3, %v1247_v36, -inf }
 0x1f9   : > { %v1316_v38 = vmul.f32 1.442695, %v1308_v29  ;;  %v1271_v43 = vrot.slane %v1270_v34, 1  ;;  %v1281_v44 = vrot.slane %v1280_v15, 4 }
 0x1fa   : > { %2339 = vpow2.f32 %v1318_v33  ;;  %v1279_v46 = vmax.f32 %v1277_v30, %v1278_v39  ;;  %v1289_v47 = vmax.f32 %v1287_v35, %v1288_v41 }
 0x1fb   : > { %2341 = vpow2.f32 %v1316_v38  ;;  %v1272_v48 = vmax.f32 %v1270_v34, %v1271_v43  ;;  %v1282_v49 = vmax.f32 %v1280_v15, %v1281_v44 }
 0x1fc   : > { %v1311_v50 = vsub.f32 %v1246_v7, %v1279_v46  ;;  %v1290_v53 = vrot.slane %v1289_v47, 2 }
 0x1fd   : > { %v1310_v54 = vsub.f32 %v1245_v11, %v1272_v48  ;;  %v1283_v55 = vrot.slane %v1282_v49, 2  ;;  %v2150_v56 = vpop.f32.mrb[22].mxu1 }
 0x1fe   : > { %v1322_v51 = vmul.f32 1.442695, %v1311_v50  ;;  %v1291_v52 = vmax.f32 %v1289_v47, %v1290_v53  ;;  %v1250_v63 = vsel %vm1226_vm9, %v2150_v56, -3.4028235e+38  ;;  %v1153_v0 = vpop.f32.mrb[23].mxu1 }
 0x1ff   : > { %v1320_v5 = vmul.f32 1.442695, %v1310_v54  ;;  %v1284_v59 = vmax.f32 %v1282_v49, %v1283_v55  ;;  %v1301_v60 = vsel %vm1251_vm3, %v1250_v63, -inf  ;;  %v1249_v61 = vsel %vm1225_vm10, %v1153_v0, -3.4028235e+38 }
 0x200   : > { %2343 = vpow2.f32 %v1322_v51  ;;  %v1292_v62 = vrot.slane %v1291_v52, 1  ;;  %v1302_v2 = vrot.slane %v1301_v60, 4  ;;  %v1294_v3 = vsel %vm1251_vm3, %v1249_v61, -inf }
 0x201   : > { %2345 = vpow2.f32 %v1320_v5  ;;  %v1285_v4 = vrot.slane %v1284_v59, 1  ;;  %v1295_v6 = vrot.slane %v1294_v3, 4 }
 0x202   : > { %v1293_v7 = vmax.f32 %v1291_v52, %v1292_v62  ;;  %v1303_v8 = vmax.f32 %v1301_v60, %v1302_v2 }
 0x203   : > { %v1286_v10 = vmax.f32 %v1284_v59, %v1285_v4  ;;  %v1296_v11 = vmax.f32 %v1294_v3, %v1295_v6 }
 0x204   : > { %v2886_v9 = vpop.eup %2339  ;;  %v1313_v14 = vsub.f32 %v1248_v31, %v1293_v7  ;;  %v1304_v17 = vrot.slane %v1303_v8, 2 }
 0x205   : > { %v2888_v12 = vpop.eup %2341  ;;  %v1339_v13 = vsel %vm1251_vm3, %v2886_v9, 0.0  ;;  %v1312_v21 = vsub.f32 %v1247_v36, %v1286_v10  ;;  %v1297_v22 = vrot.slane %v1296_v11, 2 }
 0x206   : > { %v1340_v18 = vrot.slane %v1339_v13, 4  ;;  %v1332_v20 = vsel %vm1251_vm3, %v2888_v12, 0.0  ;;  %v1326_v24 = vmul.f32 1.442695, %v1313_v14  ;;  %v1305_v25 = vmax.f32 %v1303_v8, %v1304_v17 }
 0x207   : > { %v1333_v23 = vrot.slane %v1332_v20, 4  ;;  %v1324_v27 = vmul.f32 1.442695, %v1312_v21  ;;  %v1298_v28 = vmax.f32 %v1296_v11, %v1297_v22 }
 0x208   : > { %v1341_v26 = vadd.f32 %v1340_v18, %v1339_v13  ;;  %2347 = vpow2.f32 %v1326_v24  ;;  %v1306_v30 = vrot.slane %v1305_v25, 1 }
 0x209   : > { %v1334_v29 = vadd.f32 %v1333_v23, %v1332_v20  ;;  %2349 = vpow2.f32 %v1324_v27  ;;  %v1299_v33 = vrot.slane %v1298_v28, 1 }
 0x20a   : > { %v1342_v32 = vrot.slane %v1341_v26, 2  ;;  %v2894_v31 = vpop.eup %2343  ;;  %v1307_v35 = vmax.f32 %v1305_v25, %v1306_v30 }
 0x20b   : > { %v1335_v34 = vrot.slane %v1334_v29, 2  ;;  %v2896_v38 = vpop.eup %2345  ;;  %v1353_v39 = vsel %vm1251_vm3, %v2894_v31, 0.0  ;;  %v1300_v41 = vmax.f32 %v1298_v28, %v1299_v33 }
 0x20c   : > { %v1343_v36 = vadd.f32 %v1342_v32, %v1341_v26  ;;  %v1354_v43 = vrot.slane %v1353_v39, 4  ;;  %v1346_v44 = vsel %vm1251_vm3, %v2896_v38, 0.0  ;;  %v1315_v46 = vsub.f32 %v1250_v63, %v1307_v35 }
 0x20d   : > { %v1336_v15 = vadd.f32 %v1335_v34, %v1334_v29  ;;  %v1347_v48 = vrot.slane %v1346_v44, 4  ;;  %v1314_v49 = vsub.f32 %v1249_v61, %v1300_v41 }
 0x20e   : > { %v1344_v47 = vrot.slane %v1343_v36, 1  ;;  %v1355_v53 = vadd.f32 %v1354_v43, %v1353_v39  ;;  %v1330_v54 = vmul.f32 1.442695, %v1315_v46 }
 0x20f   : > { %v1337_v50 = vrot.slane %v1336_v15, 1  ;;  %v1348_v56 = vadd.f32 %v1347_v48, %v1346_v44  ;;  %v1328_v51 = vmul.f32 1.442695, %v1314_v49 }
 0x210   : > { %v1345_v55 = vadd.f32 %v1344_v47, %v1343_v36  ;;  %v1356_v0 = vrot.slane %v1355_v53, 2  ;;  %2351 = vpow2.f32 %v1330_v54 }
 0x211   : > { %v1338_v52 = vadd.f32 %v1337_v50, %v1336_v15  ;;  %v1349_v5 = vrot.slane %v1348_v56, 2 }
 0x212   : > { %2353 = vrcp.f32 %v1345_v55  ;;  %v2902_v59 = vpop.eup %2347  ;;  %v1357_v60 = vadd.f32 %v1356_v0, %v1355_v53 }
 0x213   : > { %2355 = vrcp.f32 %v1338_v52  ;;  %v2350_v62 = vpop.eup %2349  ;;  %v1350_v63 = vadd.f32 %v1349_v5, %v1348_v56  ;;  %v1367_v61 = vsel %vm1251_vm3, %v2902_v59, 0.0 }
 0x214   : > { %2357 = vpow2.f32 %v1328_v51  ;;  %v1358_v2 = vrot.slane %v1357_v60, 1  ;;  %v1368_v3 = vrot.slane %v1367_v61, 4  ;;  %v1360_v4 = vsel %vm1251_vm3, %v2350_v62, 0.0 }
 0x215   : > { %v1351_v6 = vrot.slane %v1350_v63, 1  ;;  %v1361_v7 = vrot.slane %v1360_v4, 4 }
 0x216   : > { %v1359_v8 = vadd.f32 %v1358_v2, %v1357_v60  ;;  %v1369_v10 = vadd.f32 %v1368_v3, %v1367_v61 }
 0x217   : > { %v1352_v11 = vadd.f32 %v1351_v6, %v1350_v63  ;;  %v1362_v13 = vadd.f32 %v1361_v7, %v1360_v4 }
 0x218   : > { %2359 = vrcp.f32 %v1359_v8  ;;  %v1370_v14 = vrot.slane %v1369_v10, 2 }
 0x219   : > { %2361 = vrcp.f32 %v1352_v11  ;;  %v1363_v17 = vrot.slane %v1362_v13, 2 }
 0x21a   : > { %v2352_v18 = vpop.eup %2351  ;;  %v1371_v20 = vadd.f32 %v1370_v14, %v1369_v10 }
 0x21b   : > { %v1364_v22 = vadd.f32 %v1363_v17, %v1362_v13  ;;  %v1381_v23 = vsel %vm1251_vm3, %v2352_v18, 0.0 }
 0x21c   : > { %v2354_v21 = vpop.eup %2353  ;;  %v1372_v26 = vrot.slane %v1371_v20, 1  ;;  %v1382_v27 = vrot.slane %v1381_v23, 4 }
 0x21d   : > { %v2356_v24 = vpop.eup %2355  ;;  %v1397_v25 = vmul.f32 %v2354_v21, %v2886_v9  ;;  %v1365_v29 = vrot.slane %v1364_v22, 1 }
 0x21e   : > { %v2358_v28 = vpop.eup %2357  ;;  %v1396_v30 = vmul.f32 %v2356_v24, %v2888_v12  ;;  %v1373_v32 = vadd.f32 %v1372_v26, %v1371_v20  ;;  %v1383_v33 = vadd.f32 %v1382_v27, %v1381_v23  ;;  %v2331_v20 = vld [vmem:[%s3035_s6] sm:$0xff]   ;;  %v2332_v23 = vld [vmem:[%s3035_s6 + $0x8] sm:$0xff]  }
 0x21f   : > { %v1374_v34 = vsel %vm1251_vm3, %v2358_v28, 0.0  ;;  %v1366_v35 = vadd.f32 %v1365_v29, %v1364_v22  ;;  %v1405_v41 = vmul.f32 %v1397_v25, %v2856_v40  ;;  %2166 = vmatpush3.bf16.msra.mxu0 %v2331_v20  ;;  %v2334_v29 = vld [vmem:[%s3035_s6 + $0x18] sm:$0xff]  }
 0x220   : > { %v1375_v36 = vrot.slane %v1374_v34, 4  ;;  %v1404_v39 = vmul.f32 %v1396_v30, %v2854_v37  ;;  %2363 = vrcp.f32 %v1373_v32  ;;  %v1384_v15 = vrot.slane %v1383_v33, 2  ;;  %2167 = vmatprep.subr.bf16.mxu0 %v2467_v1  ;;  %v2335_v30 = vld [vmem:[%s3035_s6 + $0x20] sm:$0xff]   ;;  %v2336_v32 = vld [vmem:[%s3035_s6 + $0x28] sm:$0xff]  }
 0x221   : > { %2365 = vrcp.f32 %v1366_v35 }
 0x222   : > { %v1376_v9 = vadd.f32 %v1375_v36, %v1374_v34  ;;  %2153 = vmatprep.mubr.msk.f32.mxu1 %vm1251_vm3, %v1404_v39  ;;  %v2360_v43 = vpop.eup %2359  ;;  %v1385_v44 = vadd.f32 %v1384_v15, %v1383_v33  ;;  %v2337_v33 = vld [vmem:[%s3035_s6 + $0x30] sm:$0xff]   ;;  %v2338_v34 = vld [vmem:[%s3035_s6 + $0x38] sm:$0xff]  }
 0x223   : > { %2154 = vmatmul.mubr.msk.f32.vlgmr.msra.gmra.mrb[24].mxu1 %vm1251_vm3, %v1405_v41  ;;  %v2362_v12 = vpop.eup %2361  ;;  %v1399_v47 = vmul.f32 %v2360_v43, %v2894_v31  ;;  %2168 = vmatpush3.bf16.msra.mxu0 %v2332_v23 }
 0x224   : > { %v1377_v46 = vrot.slane %v1376_v9, 2  ;;  %v1386_v48 = vrot.slane %v1385_v44, 1  ;;  %v1398_v49 = vmul.f32 %v2362_v12, %v2896_v38  ;;  %2169 = vmatprep.subr.bf16.mxu0 %v2467_v1 }
 0x225   : > { %v1407_v54 = vmul.f32 %v1399_v47, %v2863_v58 }
 0x226   : > { %v1378_v37 = vadd.f32 %v1377_v46, %v1376_v9  ;;  %v1387_v50 = vadd.f32 %v1386_v48, %v1385_v44  ;;  %v1406_v40 = vmul.f32 %v1398_v49, %v2858_v57 }
 0x228   : > { %v1379_v53 = vrot.slane %v1378_v37, 1  ;;  %2367 = vrcp.f32 %v1387_v50  ;;  %2156 = vmatprep.mubr.msk.f32.mxu1 %vm1251_vm3, %v1406_v40 }
 0x229   : > { %2157 = vmatmul.mubr.msk.f32.gmra.mrb[26].mxu1 %vm1251_vm3, %v1407_v54 }
 0x22a   : > { %v1380_v55 = vadd.f32 %v1379_v53, %v1378_v37  ;;  %v2364_v56 = vpop.eup %2363 }
 0x22b   : > { %v2366_v51 = vpop.eup %2365  ;;  %v1401_v31 = vmul.f32 %v2364_v56, %v2902_v59  ;;  %v2021_v59 = vpop.f32.mrb[4].mxu0 }
 0x22c   : > { %2369 = vrcp.f32 %v1380_v55  ;;  %v1400_v52 = vmul.f32 %v2366_v51, %v2350_v62 }
 0x22d   : > { %v1409_v0 = vmul.f32 %v1401_v31, %v2870_v16 }
 0x22e   : > { %v1408_v38 = vmul.f32 %v1400_v52, %v2872_v19  ;;  %v2022_v19 = vpop.f32.mrb[5].mxu0 }
 0x22f   : > { %v2023_v62 = vadd.f32 %v2022_v19, %v2021_v59  ;;  %v2024_v16 = vpop.f32.mrb[6].mxu0 }
 0x230   : > { %2159 = vmatprep.mubr.msk.f32.mxu1 %vm1251_vm3, %v1408_v38  ;;  %v2025_v2 = vpop.f32.mrb[7].mxu0 }
 0x231   : > { %2160 = vmatmul.mubr.msk.f32.gmra.mrb[28].mxu1 %vm1251_vm3, %v1409_v0  ;;  %v2026_v3 = vadd.f32 %v2025_v2, %v2024_v16  ;;  %v2027_v4 = vpop.f32.mrb[8].mxu0 }
 0x232   : > { %v2368_v57 = vpop.eup %2367  ;;  %v2028_v6 = vpop.f32.mrb[9].mxu0 }
 0x233   : > { %v1403_v5 = vmul.f32 %v2368_v57, %v2352_v18  ;;  %v2030_v7 = vpop.f32.mrb[10].mxu0  ;;  %v2029_v10 = vadd.f32 %v2028_v6, %v2027_v4 }
 0x234   : > { %v2031_v8 = vpop.f32.mrb[11].mxu0 }
 0x235   : > { %v1411_v61 = vmul.f32 %v1403_v5, %v2878_v42  ;;  %v2032_v11 = vadd.f32 %v2031_v8, %v2030_v7  ;;  %v2033_v13 = vpop.f32.mrb[12].mxu0 }
 0x236   : > { %v2370_v58 = vpop.eup %2369 }
 0x237   : > { %v1402_v60 = vmul.f32 %v2370_v58, %v2358_v28  ;;  %v2333_v28 = vld [vmem:[%s3035_s6 + $0x10] sm:$0xff]  }
 0x238   : > { %2170 = vmatpush3.bf16.msra.mxu0 %v2333_v28 }
 0x239   : > { %v1410_v63 = vmul.f32 %v1402_v60, %v2880_v45  ;;  %v2034_v45 = vpop.f32.mrb[13].mxu0  ;;  %2171 = vmatprep.subr.bf16.mxu0 %v2467_v1 }
 0x23a   : > { %v2036_v14 = vpop.f32.mrb[14].mxu0  ;;  %v2930_v17 = vadd.f32 %v2034_v45, %v2033_v13 }
 0x23b   : > { %2162 = vmatprep.mubr.msk.f32.mxu1 %vm1251_vm3, %v1410_v63  ;;  %v2037_v42 = vpop.f32.mrb[15].mxu0 }
 0x23c   : > { %2163 = vmatmul.mubr.msk.f32.gmra.mrb[30].mxu1 %vm1251_vm3, %v1411_v61  ;;  %v2038_v18 = vadd.f32 %v2037_v42, %v2036_v14  ;;  %v2039_v21 = vpop.f32.mrb[16].mxu0  ;;  %2172 = vmatpush3.bf16.msra.mxu0 %v2334_v29 }
 0x23d   : > { %v2040_v22 = vpop.f32.mrb[17].mxu0  ;;  %2173 = vmatprep.subr.bf16.mxu0 %v2467_v1 }
 0x23e   : > { %v2042_v24 = vpop.f32.mrb[18].mxu0  ;;  %v2939_v26 = vadd.f32 %v2040_v22, %v2039_v21 }
 0x23f   : > { %v2043_v25 = vpop.f32.mrb[19].mxu0 }
 0x240   : > { %v2941_v27 = vadd.f32 %v2043_v25, %v2042_v24  ;;  %2174 = vmatpush3.bf16.msra.mxu0 %v2335_v30 }
 0x241   : > { %2175 = vmatprep.subr.bf16.mxu0 %v2467_v1 }
 0x244   : > { %2176 = vmatpush3.bf16.msra.mxu0 %v2336_v32 }
 0x245   : > { %2177 = vmatprep.subr.bf16.mxu0 %v2467_v1 }
 0x248   : > { %2178 = vmatpush3.bf16.msra.mxu0 %v2337_v33 }
 0x249   : > { %2179 = vmatprep.subr.bf16.mxu0 %v2467_v1 }
 0x24c   : > { %2180 = vmatpush3.bf16.msra.mxu0 %v2338_v34 }
 0x2f6   : > { %v2155_v35 = vpop.f32.mrb[24].mxu1 }
 0x2f7   : > { %v1547_v36 = vmul.f32 %v2155_v35, %v2026_v3  ;;  %v1507_v39 = vpop.f32.mrb[25].mxu1 }
 0x2f8   : > { %v1546_v41 = vmul.f32 %v2023_v62, %v1507_v39 }
 0x2f9   : > { %v1560_v15 = vrot.slane %v1547_v36, 4 }
 0x2fa   : > { %v1554_v9 = vrot.slane %v1546_v41, 4 }
 0x2fb   : > { %v1561_v43 = vadd.f32 %v1560_v15, %v1547_v36 }
 0x2fc   : > { %v1555_v44 = vadd.f32 %v1554_v9, %v1546_v41  ;;  %v2158_v46 = vpop.f32.mrb[26].mxu1 }
 0x2fd   : > { %v1562_v12 = vrot.slane %v1561_v43, 2  ;;  %v1549_v48 = vmul.f32 %v2158_v46, %v2032_v11  ;;  %v1517_v49 = vpop.f32.mrb[27].mxu1 }
 0x2fe   : > { %v1556_v47 = vrot.slane %v1555_v44, 2  ;;  %v1548_v1 = vmul.f32 %v2029_v10, %v1517_v49 }
 0x2ff   : > { %v1563_v37 = vadd.f32 %v1562_v12, %v1561_v43  ;;  %v1572_v40 = vrot.slane %v1549_v48, 4 }
 0x300   : > { %v1557_v50 = vadd.f32 %v1556_v47, %v1555_v44  ;;  %v1566_v54 = vrot.slane %v1548_v1, 4 }
 0x301   : > { %v1564_v53 = vrot.slane %v1563_v37, 1  ;;  %v1573_v56 = vadd.f32 %v1572_v40, %v1549_v48 }
 0x302   : > { %v1558_v55 = vrot.slane %v1557_v50, 1  ;;  %v1567_v31 = vadd.f32 %v1566_v54, %v1548_v1 }
 0x303   : > { %v1565_v51 = vadd.f32 %v1564_v53, %v1563_v37  ;;  %v1574_v38 = vrot.slane %v1573_v56, 2 }
 0x304   : > { %v1559_v52 = vadd.f32 %v1558_v55, %v1557_v50  ;;  %v1568_v57 = vrot.slane %v1567_v31, 2  ;;  %v2161_v58 = vpop.f32.mrb[28].mxu1 }
 0x305   : > { %v1603_v0 = vpack.c.bf16 %v1565_v51, %v1565_v51  ;;  %v1575_v60 = vadd.f32 %v1574_v38, %v1573_v56  ;;  %v1551_v63 = vmul.f32 %v2161_v58, %v2038_v18  ;;  %v1527_v61 = vpop.f32.mrb[29].mxu1 }
 0x306   : > { %v1602_v5 = vpack.c.bf16 %v1559_v52, %v1559_v52  ;;  %v1569_v19 = vadd.f32 %v1568_v57, %v1567_v31  ;;  %v1550_v62 = vmul.f32 %v2930_v17, %v1527_v61 }
 0x307   : > { %v1635_v59 = vunpack.c.l.b16 %v1603_v0  ;;  %v1576_v2 = vrot.slane %v1575_v60, 1  ;;  %v1584_v3 = vrot.slane %v1551_v63, 4 }
 0x308   : > { %v1634_v16 = vunpack.c.l.b16 %v1602_v5  ;;  %v1570_v4 = vrot.slane %v1569_v19, 1  ;;  %v1578_v6 = vrot.slane %v1550_v62, 4 }
 0x309   : > { %v1577_v8 = vadd.f32 %v1576_v2, %v1575_v60  ;;  %v1585_v10 = vadd.f32 %v1584_v3, %v1551_v63 }
 0x30a   : > { %v1643_v7 = vsel %vm1642_vm11, %v1635_v59, %v1634_v16  ;;  %v1571_v11 = vadd.f32 %v1570_v4, %v1569_v19  ;;  %v1579_v13 = vadd.f32 %v1578_v6, %v1550_v62 }
 0x30b   : > { %v1605_v45 = vpack.c.bf16 %v1577_v8, %v1577_v8  ;;  %v1586_v14 = vrot.slane %v1585_v10, 2 }
 0x30c   : > { %v1604_v42 = vpack.c.bf16 %v1571_v11, %v1571_v11  ;;  %v1580_v18 = vrot.slane %v1579_v13, 2 }
 0x30d   : > { %v1587_v20 = vadd.f32 %v1586_v14, %v1585_v10  ;;  %v1637_v23 = vunpack.c.l.b16 %v1605_v45 }
 0x30e   : > { %v1636_v21 = vunpack.c.l.b16 %v1604_v42  ;;  %v1581_v22 = vadd.f32 %v1580_v18, %v1579_v13 }
 0x30f   : > { %v2164_v17 = vpop.f32.mrb[30].mxu1  ;;  %v1588_v24 = vrot.slane %v1587_v20, 1 }
 0x310   : > { %v1553_v25 = vmul.f32 %v2164_v17, %v2941_v27  ;;  %v1537_v28 = vpop.f32.mrb[31].mxu1  ;;  %v1645_v29 = vsel %vm1644_vm12, %v1636_v21, %v1643_v7  ;;  %v1582_v30 = vrot.slane %v1581_v22, 1 }
 0x311   : > { %v1552_v32 = vmul.f32 %v2939_v26, %v1537_v28  ;;  %v1589_v33 = vadd.f32 %v1588_v24, %v1587_v20  ;;  %v1647_v34 = vsel %vm1646_vm13, %v1637_v23, %v1645_v29 }
 0x312   : > { %v1596_v35 = vrot.slane %v1553_v25, 4  ;;  %v1583_v36 = vadd.f32 %v1582_v30, %v1581_v22 }
 0x313   : > { %v1590_v39 = vrot.slane %v1552_v32, 4  ;;  %v1607_v41 = vpack.c.bf16 %v1589_v33, %v1589_v33 }
 0x314   : > { %v1597_v15 = vadd.f32 %v1596_v35, %v1553_v25  ;;  %v1606_v9 = vpack.c.bf16 %v1583_v36, %v1583_v36 }
 0x315   : > { %v1591_v43 = vadd.f32 %v1590_v39, %v1552_v32  ;;  %v1639_v27 = vunpack.c.l.b16 %v1607_v41 }
 0x316   : > { %v1598_v44 = vrot.slane %v1597_v15, 2  ;;  %v1638_v12 = vunpack.c.l.b16 %v1606_v9 }
 0x317   : > { %v1592_v46 = vrot.slane %v1591_v43, 2 }
 0x318   : > { %v1599_v47 = vadd.f32 %v1598_v44, %v1597_v15  ;;  %v1649_v48 = vsel %vm1648_vm14, %v1638_v12, %v1647_v34 }
 0x319   : > { %v1593_v49 = vadd.f32 %v1592_v46, %v1591_v43  ;;  %v1651_v37 = vsel %vm1650_vm15, %v1639_v27, %v1649_v48 }
 0x31a   : > { %v1600_v26 = vrot.slane %v1599_v47, 1 }
 0x31b   : > { %v1594_v1 = vrot.slane %v1593_v49, 1 }
 0x31c   : > { %v1601_v50 = vadd.f32 %v1600_v26, %v1599_v47 }
 0x31d   : > { %v1595_v40 = vadd.f32 %v1594_v1, %v1593_v49 }
 0x31e   : > { %v1609_v53 = vpack.c.bf16 %v1601_v50, %v1601_v50 }
 0x31f   : > { %v1608_v54 = vpack.c.bf16 %v1595_v40, %v1595_v40 }
 0x320   : > { %v1641_v56 = vunpack.c.l.b16 %v1609_v53 }
 0x321   : > { %v1640_v55 = vunpack.c.l.b16 %v1608_v54 }
 0x323   : > { %v1653_v51 = vsel %vm1652_vm0, %v1640_v55, %v1651_v37 }
 0x324   : > { %v1655_v31 = vsel %vm1654_vm1, %v1641_v56, %v1653_v51 }
 0x325   : > { %v1656_v52 = vpack.c.b16 %v1655_v31, %v1655_v31 }
 0x327   : > { %2182 = vmatmul.mubr.bf16.vlgmr.msra.gmra.mrb[20].mxu0 %v1656_v52 }
 0x3fa   : > { %v1740_v38 = vpop.f32.mrb[20].mxu0 }
 0x3fb   : > { %1746 = vst [vmem:[%s398_s11] sm:$0xff] %v1740_v38  ;;  %v2183_v0 = vpop.f32.mrb[21].mxu0 }
 0x3fc   : > { %v1743_v57 = vpop.f32.mrb[22].mxu0 }
 0x3fd   : > { %2384 = shalt.err (!%p2381_p9)
}
 0x3fe   : > { %s2385_s27 = scalar_lea.hbm %s2978_s18, 128  ;;  %s2389_s14 = scalar_lea.hbm %s3038_s9, 1024 }
 0x3ff   : > { %p2386_p10 = scmp.ne.s32.totalorder %s2978_s18, %s2385_s27  ;;  %p2390_p13 = scmp.lt.u32.totalorder %s2978_s18, %s3038_s9 }
 0x400   : > { %p2391_p0 = scmp.lt.u32.totalorder %s2389_s14, %s2385_s27  ;;  %p2393_p2 = scmp.lt.u32.totalorder %s2385_s27, %s2978_s18 }
 0x401   : > { %p2387_p11 = pnand %p2386_p10, %p2572_p3 }
 0x402   : > { %p2392_p1 = por %p2391_p0, %p2390_p13 }
 0x403   : > { %p2388_p12 = pneg %p2387_p11 }
 0x404   : > { %p2394_p4 = por %p2393_p2, %p2392_p1 }
 0x406   : > { %p2395_p5 = pnand %p2394_p4, %p2388_p12 }
 0x408   : > { %2398 = shalt.err (!%p2395_p5)
}
 0x409   : > { %2217 = dma.vmem_to_hbm [thread:$0]  (%p2572_p3), %s2973_s17, 128, %s2978_s18, %s1748_s15   ;;  %v2184_v58 = vpop.f32.mrb[23].mxu0 }
 0x40a PF: > { %p2223_p6 = scmp.ge.s32.totalorder %s2465_s16, 2  ;;  %s1775_s29 = sand.u32 1, %s2437_s30  }
 0x40b   : > { %s1776_s23 = scalar_lea.sflag [#allocation3], %s1775_s29 }
 0x40c   : > { %p2220_p7 = pnand %p2223_p6, %p2581_p8 }
 0x40e   : > { %2432 = dma.done.wait (!%p2220_p7), %s1776_s23, 128  }
 0x40f   : > { %2434 = vsyncadd (!%p2220_p7), %s1776_s23, 4294967168  ;;  %s22_s16 = sadd.s32 1, %s2465_s16   ;;  %s3055_s22 = sld [smem:[#allocation5_spill]] }
 0x410   : > { %p19_p9 = scmp.ge.s32.totalorder %s22_s16, 10   ;;  %s3056_s11 = sld [smem:[#allocation11_spill]] }
 0x411   : > { %s3057_s12 = sld [smem:[#allocation6_spill]]  ;;  %s3058_s13 = sld [smem:[#allocation7_spill]] }
 0x412   : > { %s3059_s14 = sld [smem:[#allocation8_spill]]  ;;  %s3060_s15 = sld [smem:[#allocation9_spill]] }
 0x413   : > { %s3061_s30 = smov %s2441_s10  ;;  %21 = sbr.rel (!%p19_p9) target bundleno = 5 (0x5), region = 97 }
 0x415   : > { %s3062_s10 = smov %s3055_s22 }
 0x41a   :  { %1781 = vsyncpa [#allocation3], 1 }
 0x41b   :  { %1783 = vsyncpa [#allocation3 + $0x1], 1 }

</bundles_post_ra>
